<compile_context>
chip_gen: v7x
topology: tpu7x:2x2x1
jax: 0.10.0
libtpu: 0.0.40
codegen_flags: <defaults>
</compile_context>

<pallas_src>
import jax
import jax.numpy as jnp
from jax.experimental import pallas as pl
from jax.experimental.pallas import tpu as pltpu

LANE = 128
SUBLANE = 8


def two_layer_kernel(x_ref, w1_ref, b1_ref, w2_ref, b2_ref, out_ref):
    # Layer 1: z0 = x @ W1 + b1   (bf16 MXU inputs, f32 accumulation)
    x_bf = x_ref[...].astype(jnp.bfloat16)
    w1_bf = w1_ref[...].astype(jnp.bfloat16)
    z0 = jnp.dot(x_bf, w1_bf, preferred_element_type=jnp.float32)
    z0 = z0 + b1_ref[...]                      # (TB, H) + (1, H) broadcast, f32
    # ReLU in f32 on the VPU.
    u0 = jnp.maximum(z0, 0.0)
    # Layer 2: y = relu(z0) @ W2 + b2  (W2/b2 already lane-padded to 128 cols)
    y = jnp.dot(u0.astype(jnp.bfloat16), w2_ref[...].astype(jnp.bfloat16),
                preferred_element_type=jnp.float32)
    y = y + b2_ref[...]                        # (TB, O_pad) + (1, O_pad) broadcast
    out_ref[...] = y.astype(out_ref.dtype)     # lane-dense store (O_pad % 128 == 0)


def _round_up(n, m):
    return pl.cdiv(n, m) * m


def two_layer_forward(x, w1, b1, w2, b2, *, block_b=128):
    """Fused (Linear -> ReLU -> Linear) forward. Returns (B, output_dim) f32."""
    B, D_in = x.shape
    H = w1.shape[1]
    O = w2.shape[1]

    # Lane-dense output block: pad the output feature dim up to a multiple of 128.
    O_pad = _round_up(O, LANE)
    if O_pad != O:
        w2 = jnp.pad(w2, ((0, 0), (0, O_pad - O)))
        b2 = jnp.pad(b2, ((0, 0), (0, O_pad - O)))

    # Batch tiling: pick a tile, pad B so the grid divides evenly.
    B8 = _round_up(B, SUBLANE)
    tb = min(block_b, B8)
    B_pad = _round_up(B8, tb)
    if B_pad != B:
        x = jnp.pad(x, ((0, B_pad - B), (0, 0)))

    grid = (B_pad // tb,)

    out = pl.pallas_call(
        two_layer_kernel,
        out_shape=jax.ShapeDtypeStruct((B_pad, O_pad), jnp.float32),
        grid=grid,
        in_specs=[
            # x: tiled along batch (double-buffered by the pipeline).
            pl.BlockSpec((tb, D_in), lambda i: (i, 0)),
            # Weights / biases: full-array blocks, loop-invariant -> VMEM resident.
            pl.BlockSpec((D_in, H), lambda i: (0, 0)),
            pl.BlockSpec((1, H), lambda i: (0, 0)),
            pl.BlockSpec((H, O_pad), lambda i: (0, 0)),
            pl.BlockSpec((1, O_pad), lambda i: (0, 0)),
        ],
        out_specs=pl.BlockSpec((tb, O_pad), lambda i: (i, 0)),
        compiler_params=pltpu.CompilerParams(
            # Batch tiles are independent -> parallel (2x on v7x's two TensorCores).
            dimension_semantics=("parallel",)),
    )(x, w1, b1, w2, b2)

    # Strip batch padding and the lane padding of the output dim.
    return out[:B, :O]


def init_params(key, input_dim, hidden_dim, output_dim):
    # Deterministic init mimicking PyTorch nn.Linear default:
    # U(-1/sqrt(fan_in), 1/sqrt(fan_in)) for both weights and biases.
    k1, k2, k3, k4 = jax.random.split(key, 4)
    bound1 = 1.0 / jnp.sqrt(input_dim)
    bound2 = 1.0 / jnp.sqrt(hidden_dim)
    w1 = jax.random.uniform(k1, (input_dim, hidden_dim), jnp.float32, -bound1, bound1)
    b1 = jax.random.uniform(k2, (1, hidden_dim), jnp.float32, -bound1, bound1)
    w2 = jax.random.uniform(k3, (hidden_dim, output_dim), jnp.float32, -bound2, bound2)
    b2 = jax.random.uniform(k4, (1, output_dim), jnp.float32, -bound2, bound2)
    return w1, b1, w2, b2


if __name__ == "__main__":
    # Batch large enough to exercise the batch tiling (2 grid steps at TB=128);
    # feature dims match the original toy module.
    batch, input_dim, hidden_dim, output_dim = 256, 16, 32, 8

    key = jax.random.PRNGKey(0)
    kx, kp = jax.random.split(key)
    x = jax.random.normal(kx, (batch, input_dim), jnp.float32)
    w1, b1, w2, b2 = init_params(kp, input_dim, hidden_dim, output_dim)

    y = two_layer_forward(x, w1, b1, w2, b2, block_b=128)
    jax.block_until_ready(y)

    # Pure-JAX f32 reference of the forward semantics. Kernel feeds the MXU bf16
    # (f32 accumulation), so tolerate ~1e-2-level rounding vs the f32 reference.
    ref = jnp.maximum(x @ w1 + b1, 0.0) @ w2 + b2
    assert y.shape == (batch, output_dim)
    assert jnp.allclose(y, ref, atol=5e-2, rtol=5e-2), \
        float(jnp.max(jnp.abs(y - ref)))

    print("KERNEL_OK")
</pallas_src>

<mosaic_0001>
module attributes {stable_mosaic.version = 11 : i64} {
  func.func @two_layer_kernel(%arg0: i32, %arg1: memref<128x16xf32, #tpu.memory_space<vmem>>, %arg2: memref<16x32xf32, #tpu.memory_space<vmem>>, %arg3: memref<1x32xf32, #tpu.memory_space<vmem>>, %arg4: memref<32x128xf32, #tpu.memory_space<vmem>>, %arg5: memref<1x128xf32, #tpu.memory_space<vmem>>, %arg6: memref<128x128xf32, #tpu.memory_space<vmem>>) attributes {dimension_semantics = [#tpu.dimension_semantics<parallel>], iteration_bounds = array<i64: 2>, scalar_prefetch = 0 : i64, scratch_operands = 0 : i64, tpu.core_type = #tpu.core_type<tc>, window_params = [{transform_indices = @transform_0, window_bounds = array<i64: 128, 16>}, {pipeline_mode = #tpu.pipeline_mode<synchronous>, transform_indices = @transform_1, window_bounds = array<i64: 16, 32>}, {pipeline_mode = #tpu.pipeline_mode<synchronous>, transform_indices = @transform_2, window_bounds = array<i64: 1, 32>}, {pipeline_mode = #tpu.pipeline_mode<synchronous>, transform_indices = @transform_3, window_bounds = array<i64: 32, 128>}, {pipeline_mode = #tpu.pipeline_mode<synchronous>, transform_indices = @transform_4, window_bounds = array<i64: 1, 128>}, {transform_indices = @transform_5, window_bounds = array<i64: 128, 128>}]} {
    %c0 = arith.constant 0 : index
    %c0_0 = arith.constant 0 : index
    %0 = vector.load %arg1[%c0, %c0_0] : memref<128x16xf32, #tpu.memory_space<vmem>>, vector<128x16xf32>
    %1 = arith.truncf %0 : vector<128x16xf32> to vector<128x16xbf16>
    %c0_1 = arith.constant 0 : index
    %c0_2 = arith.constant 0 : index
    %2 = vector.load %arg2[%c0_1, %c0_2] : memref<16x32xf32, #tpu.memory_space<vmem>>, vector<16x32xf32>
    %3 = arith.truncf %2 : vector<16x32xf32> to vector<16x32xbf16>
    %cst = arith.constant dense<0.000000e+00> : vector<128x32xf32>
    %4 = tpu.matmul %1, %3, %cst {dimension_numbers = #tpu.dot_dimension_numbers<[1], [0], [0], [1], [0, 0, 1, 1], [], []>} : vector<128x16xbf16>, vector<16x32xbf16>, vector<128x32xf32> -> vector<128x32xf32>
    %c0_3 = arith.constant 0 : index
    %c0_4 = arith.constant 0 : index
    %5 = vector.load %arg3[%c0_3, %c0_4] : memref<1x32xf32, #tpu.memory_space<vmem>>, vector<1x32xf32>
    %6 = vector.broadcast %5 : vector<1x32xf32> to vector<128x32xf32>
    %7 = arith.addf %4, %6 : vector<128x32xf32>
    %cst_5 = arith.constant 0.000000e+00 : f32
    %8 = vector.broadcast %cst_5 : f32 to vector<128x32xf32>
    %9 = arith.maximumf %7, %8 : vector<128x32xf32>
    %10 = arith.truncf %9 : vector<128x32xf32> to vector<128x32xbf16>
    %c0_6 = arith.constant 0 : index
    %c0_7 = arith.constant 0 : index
    %11 = vector.load %arg4[%c0_6, %c0_7] : memref<32x128xf32, #tpu.memory_space<vmem>>, vector<32x128xf32>
    %12 = arith.truncf %11 : vector<32x128xf32> to vector<32x128xbf16>
    %cst_8 = arith.constant dense<0.000000e+00> : vector<128x128xf32>
    %13 = tpu.matmul %10, %12, %cst_8 {dimension_numbers = #tpu.dot_dimension_numbers<[1], [0], [0], [1], [0, 0, 1, 1], [], []>} : vector<128x32xbf16>, vector<32x128xbf16>, vector<128x128xf32> -> vector<128x128xf32>
    %c0_9 = arith.constant 0 : index
    %c0_10 = arith.constant 0 : index
    %14 = vector.load %arg5[%c0_9, %c0_10] : memref<1x128xf32, #tpu.memory_space<vmem>>, vector<1x128xf32>
    %15 = vector.broadcast %14 : vector<1x128xf32> to vector<128x128xf32>
    %16 = arith.addf %13, %15 : vector<128x128xf32>
    %c0_11 = arith.constant 0 : index
    %c0_12 = arith.constant 0 : index
    %17 = vector.load %arg6[%c0_11, %c0_12] : memref<128x128xf32, #tpu.memory_space<vmem>>, vector<128x128xf32>
    tpu.vector_store %arg6[%c0_11, %c0_12], %16 {strides = array<i32>} : memref<128x128xf32, #tpu.memory_space<vmem>>, vector<128x128xf32>,
    return
  }
  func.func @transform_0(%arg0: i32) -> (i32, i32) {
    %c0_i32 = arith.constant 0 : i32
    %c0_i32_0 = arith.constant 0 : i32
    return %arg0, %c0_i32 : i32, i32
  }
  func.func @transform_1(%arg0: i32) -> (i32, i32) {
    %c0_i32 = arith.constant 0 : i32
    %c0_i32_0 = arith.constant 0 : i32
    %c0_i32_1 = arith.constant 0 : i32
    return %c0_i32, %c0_i32_0 : i32, i32
  }
  func.func @transform_2(%arg0: i32) -> (i32, i32) {
    %c0_i32 = arith.constant 0 : i32
    %c0_i32_0 = arith.constant 0 : i32
    %c0_i32_1 = arith.constant 0 : i32
    return %c0_i32, %c0_i32_0 : i32, i32
  }
  func.func @transform_3(%arg0: i32) -> (i32, i32) {
    %c0_i32 = arith.constant 0 : i32
    %c0_i32_0 = arith.constant 0 : i32
    %c0_i32_1 = arith.constant 0 : i32
    return %c0_i32, %c0_i32_0 : i32, i32
  }
  func.func @transform_4(%arg0: i32) -> (i32, i32) {
    %c0_i32 = arith.constant 0 : i32
    %c0_i32_0 = arith.constant 0 : i32
    %c0_i32_1 = arith.constant 0 : i32
    return %c0_i32, %c0_i32_0 : i32, i32
  }
  func.func @transform_5(%arg0: i32) -> (i32, i32) {
    %c0_i32 = arith.constant 0 : i32
    %c0_i32_0 = arith.constant 0 : i32
    return %arg0, %c0_i32 : i32, i32
  }
}

</mosaic_0001>

<bundles_post_ra>
// kernel: tpu_custom_call.1
= control target key start
LH: loop header
LB: loop body
LE: loop exit
PB: predicated region body
PF: predicated region fallthrough
CT: control target
= control target key end

     0   :  { %10 = vsyncpa [#allocation3], 0  ;;  %s1043_s0 = inlined_call_operand.vmem [shape: f32[256,16], index: 0, kind: input, shape index: {}]   ;;  %s1044_s1 = inlined_call_operand.vmem [shape: f32[16,32], index: 1, kind: input, shape index: {}]   ;;  %s1045_s2 = inlined_call_operand.vmem [shape: f32[1,32], index: 2, kind: input, shape index: {}]   ;;  %s1046_s3 = inlined_call_operand.vmem [shape: f32[32,128], index: 3, kind: input, shape index: {}]   ;;  %s1047_s4 = inlined_call_operand.vmem [shape: f32[1,128], index: 4, kind: input, shape index: {}]   ;;  %s1048_s5 = inlined_call_operand.hbm [shape: f32[256,128], index: 5, kind: output, shape index: {}]  }
   0x1   :  { %12 = vsyncpa [#allocation3 + $0x1], 0  ;;  %s860_s18 = smov 0   ;;  %s862_s19 = smov 0  }
   0x2   :  { %s864_s20 = smov 0   ;;  %s866_s21 = smov 0  }
   0x3 LB: > { %s881_s22 = sadd.s32 4294967295, %s825_s21   ;;  %s634_s23 = sadd.s32 4294967294, %s825_s21   ;;  %s825_s21 = sphi %s866_s21, %s1054_s21   ;;  %s821_s20 = sphi %s864_s20, %s1053_s20   ;;  %s817_s19 = sphi %s862_s19, %s1052_s19   ;;  %s813_s18 = sphi %s860_s18, %s1051_s18  }
   0x4   : > { %s885_s24 = sadd.s32 1, %s825_s21   ;;  %s135_s25 = sadd.s32 1, %s821_s20 }
   0x5   : > { %s132_s26 = ssub.s32 %s825_s21, %s885_s24  ;;  %p145_p0 = scmp.ne.s32.totalorder %s821_s20, %s817_s19 }
   0x6   : > { %p133_p1 = scmp.eq.s32.totalorder %s132_s26, 0  ;;  %p146_p2 = scmp.eq.s32.totalorder %s881_s22, 1 }
   0x7   : > { %p151_p3 = scmp.ne.s32.totalorder %s817_s19, %s813_s18  ;;  %p152_p4 = scmp.eq.s32.totalorder %s634_s23, 1 }
   0x8   : > { %s896_s27 = scalar_select %p133_p1, %s821_s20, %s135_s25  }
   0x9   : > { %p898_p5 = por %p146_p2, %p145_p0  ;;  %p902_p6 = por %p152_p4, %p151_p3 }
   0xa   : > { %p637_p7 = scmp.ge.s32.totalorder %s825_s21, 1  ;;  %p191_p8 = scmp.lt.s32.totalorder %s825_s21, 3 }
   0xc   : > { %p192_p9 = pnand %p637_p7, %p191_p8 }
   0xd   : > { %v251_v0 = vld [vmem:[%s1044_s1] sm:$0xff] (!%p192_p9)  ;;  %v252_v1 = vld [vmem:[%s1044_s1 + $0x8] sm:$0xff] (!%p192_p9)  ;;  %s639_s9 = sshll.u32 (!%p192_p9), %s881_s22, 4  ;;  %vm261_vm0 = vcmask (!%p192_p9), 130048   ;;  %v409_v30 = vld [vmem:[%s1046_s3 + $0x10] sm:$0xff] (!%p192_p9)  ;;  %vm420_vm1 = vcmask (!%p192_p9), 261120  }
   0xe   : > { %195 = sbr.rel (%p192_p9) target bundleno = 506 (0x1fa), region = 40  ;;  %v253_v2 = vpack.c.bf16 (!%p192_p9), %v252_v1, %v251_v0  ;;  %p220_p10 = scmp.lt.s32.totalorder (!%p192_p9), %s639_s9, 31  ;;  %v407_v27 = vld [vmem:[%s1046_s3] sm:$0xff] (!%p192_p9)  ;;  %v408_v28 = vld [vmem:[%s1046_s3 + $0x8] sm:$0xff] (!%p192_p9)  ;;  %v410_v31 = vld [vmem:[%s1046_s3 + $0x18] sm:$0xff] (!%p192_p9) }
   0xf   : > { %v411_v29 = vpack.c.bf16 (!%p192_p9), %v408_v28, %v407_v27  ;;  %v412_v32 = vpack.c.bf16 (!%p192_p9), %v410_v31, %v409_v30  ;;  %v641_v33 = vld [vmem:[%s1045_s2] ss:$0 sm:$0xff] (!%p192_p9)  ;;  %s216_s8 = sand.u32 (!%p192_p9), 1, %s817_s19   ;;  %s827_s25 = smov (!%p192_p9), [#allocation2]  }
  0x10   : > { %684 = vmatprep.subr.bf16.mxu0 (!%p192_p9), %v253_v2  ;;  %s767_s26 = sshll.u32 (!%p192_p9), %s827_s25, 4  ;;  %s768_s26 = int_to_ptr.vmem [resolvable:$false] %s767_s26 }
  0x11   : > { %685 = vmatpush3.bf16.msra.mxu0 (!%p192_p9), %v253_v2  ;;  %702 = vmatprep.subr.bf16.mxu1 (!%p192_p9), %v411_v29  ;;  %s769_s30 = scalar_lea.vmem (!%p192_p9), %s768_s26, 4096 }
  0x12   : > { %703 = vmatpush3.bf16.msra.mxu1 (!%p192_p9), %v411_v29 }
  0x13   : > { %704 = vmatprep.subr.bf16.mxu1 (!%p192_p9), %v412_v32 }
  0x15   : > { %s1056_s9 = smov (!%p220_p10, %s639_s9), 31 }
  0x16   : > { %s640_s10 = sshll.u32 %s1056_s9, 3  ;;  %705 = vmatpush3.bf16.msra.mxu1 %v412_v32  ;;  %s638_s9 = sshll.u32 %s216_s8, 7 }
  0x17   : > { %s918_s13 = scalar_lea.vmem %s1043_s0, %s640_s10  ;;  %s973_s12 = scalar_lea.vmem [#allocation2], %s638_s9 }
  0x18   : > { %v227_v3 = vld [vmem:[%s918_s13] sm:$0xff]  ;;  %v228_v4 = vld [vmem:[%s918_s13 + $0x8] sm:$0xff]  ;;  %v229_v5 = vld [vmem:[%s918_s13 + $0x10] sm:$0xff]  ;;  %s572_s14 = sshll.u32 %s973_s12, 4  ;;  %s995_s14 = int_to_ptr.vmem [resolvable:$true] %s572_s14 }
  0x19   : > { %v243_v6 = vpack.c.bf16 %v228_v4, %v227_v3  ;;  %v230_v7 = vld [vmem:[%s918_s13 + $0x18] sm:$0xff]  ;;  %v231_v8 = vld [vmem:[%s918_s13 + $0x20] sm:$0xff]  ;;  %v232_v9 = vld [vmem:[%s918_s13 + $0x28] sm:$0xff]  ;;  %s763_s23 = scalar_lea.vmem %s995_s14, 2048  ;;  %p770_p0 = scmp.lt.s32.totalorder %s995_s14, %s768_s26 }
  0x1a   : > { %v244_v10 = vpack.c.bf16 %v230_v7, %v229_v5  ;;  %v245_v11 = vpack.c.bf16 %v232_v9, %v231_v8  ;;  %v233_v12 = vld [vmem:[%s918_s13 + $0x30] sm:$0xff]  ;;  %v234_v13 = vld [vmem:[%s918_s13 + $0x38] sm:$0xff]  ;;  %v235_v14 = vld [vmem:[%s918_s13 + $0x40] sm:$0xff]  ;;  %p764_p11 = scmp.ne.s32.totalorder %s995_s14, %s763_s23  ;;  %p771_p1 = scmp.lt.s32.totalorder %s769_s30, %s763_s23 }
  0x1b   : > { %686 = vmatprep.mubr.msk.bf16.mxu0 %vm261_vm0, %v243_v6  ;;  %v236_v15 = vld [vmem:[%s918_s13 + $0x48] sm:$0xff]  ;;  %v246_v16 = vpack.c.bf16 %v234_v13, %v233_v12  ;;  %v237_v18 = vld [vmem:[%s918_s13 + $0x50] sm:$0xff]  ;;  %v238_v19 = vld [vmem:[%s918_s13 + $0x58] sm:$0xff] }
  0x1c   : > { %687 = vmatmul.mubr.msk.bf16.vlgmr.msra.gmra.mrb[0].mxu0 %vm261_vm0, %v244_v10  ;;  %v247_v17 = vpack.c.bf16 %v236_v15, %v235_v14  ;;  %v239_v20 = vld [vmem:[%s918_s13 + $0x60] sm:$0xff]  ;;  %v240_v21 = vld [vmem:[%s918_s13 + $0x68] sm:$0xff]  ;;  %v248_v22 = vpack.c.bf16 %v238_v19, %v237_v18  ;;  %v241_v24 = vld [vmem:[%s918_s13 + $0x70] sm:$0xff]  ;;  %p765_p12 = pnand %p764_p11, %p898_p5  ;;  %p772_p2 = por %p771_p1, %p770_p0 }
  0x1d   : > { %690 = vmatprep.mubr.msk.bf16.mxu0 %vm261_vm0, %v245_v11  ;;  %v249_v23 = vpack.c.bf16 %v240_v21, %v239_v20  ;;  %v242_v25 = vld [vmem:[%s918_s13 + $0x78] sm:$0xff]  ;;  %s664_s13 = sshll.u32 %s881_s22, 11  ;;  %s1002_s22 = scalar_lea.sflag [#allocation3], %s216_s8 }
  0x1e   : > { %v250_v26 = vpack.c.bf16 %v242_v25, %v241_v24  ;;  %s993_s17 = scalar_lea.hbm %s1048_s5, %s664_s13  ;;  %p766_p13 = pneg %p765_p12 }
  0x20   : > { %p773_p3 = pnand %p772_p2, %p766_p13 }
  0x24   : > { %691 = vmatmul.mubr.msk.bf16.gmra.mrb[4].mxu0 %vm261_vm0, %v246_v16 }
  0x25   : > { %694 = vmatprep.mubr.msk.bf16.mxu0 %vm261_vm0, %v247_v17 }
  0x2c   : > { %695 = vmatmul.mubr.msk.bf16.gmra.mrb[8].mxu0 %vm261_vm0, %v248_v22 }
  0x2d   : > { %698 = vmatprep.mubr.msk.bf16.mxu0 %vm261_vm0, %v249_v23 }
  0x34   : > { %699 = vmatmul.mubr.msk.bf16.gmra.mrb[12].mxu0 %vm261_vm0, %v250_v26  ;;  %v650_v26 = vld [vmem:[%s1047_s4] ss:$0 sm:$0xff] }
  0xef   : > { %v688_v34 = vpop.f32.mrb[0].mxu0 }
  0xf0   : > { %v329_v35 = vadd.f32 %v688_v34, %v641_v33  ;;  %v320_v36 = vpop.f32.mrb[1].mxu0 }
  0xf1   : > { %v321_v37 = vadd.f32 %v641_v33, %v320_v36  ;;  %v689_v38 = vpop.f32.mrb[2].mxu0 }
  0xf2   : > { %v332_v39 = vadd.f32 %v689_v38, %v641_v33  ;;  %v323_v40 = vpop.f32.mrb[3].mxu0  ;;  %v385_v42 = vmax.f32 %v329_v35, 0.0 }
  0xf3   : > { %v324_v41 = vadd.f32 %v641_v33, %v323_v40  ;;  %v383_v44 = vmax.f32 %v321_v37, 0.0 }
  0xf4   : > { %v386_v43 = vmax.f32 %v332_v39, 0.0 }
  0xf5   : > { %v384_v45 = vmax.f32 %v324_v41, 0.0 }
  0xf6   : > { %v400_v46 = vpack.c.bf16 %v386_v43, %v385_v42 }
  0xf7   : > { %v692_v47 = vpop.f32.mrb[4].mxu0  ;;  %v399_v48 = vpack.c.bf16 %v384_v45, %v383_v44 }
  0xf8   : > { %v345_v49 = vadd.f32 %v692_v47, %v641_v33  ;;  %v336_v50 = vpop.f32.mrb[5].mxu0 }
  0xf9   : > { %v337_v51 = vadd.f32 %v641_v33, %v336_v50  ;;  %v693_v52 = vpop.f32.mrb[6].mxu0  ;;  %706 = vmatprep.mubr.msk.bf16.mxu1 %vm420_vm1, %v399_v48 }
  0xfa   : > { %v348_v53 = vadd.f32 %v693_v52, %v641_v33  ;;  %v339_v54 = vpop.f32.mrb[7].mxu0  ;;  %707 = vmatmul.mubr.msk.bf16.vlgmr.msra.gmra.mrb[0].mxu1 %vm420_vm1, %v400_v46  ;;  %v389_v56 = vmax.f32 %v345_v49, 0.0 }
  0xfb   : > { %v340_v55 = vadd.f32 %v641_v33, %v339_v54  ;;  %v387_v58 = vmax.f32 %v337_v51, 0.0 }
  0xfc   : > { %v390_v57 = vmax.f32 %v348_v53, 0.0 }
  0xfd   : > { %v388_v59 = vmax.f32 %v340_v55, 0.0 }
  0xfe   : > { %v402_v60 = vpack.c.bf16 %v390_v57, %v389_v56 }
  0xff   : > { %v401_v61 = vpack.c.bf16 %v388_v59, %v387_v58  ;;  %v696_v62 = vpop.f32.mrb[8].mxu0 }
 0x100   : > { %v361_v63 = vadd.f32 %v696_v62, %v641_v33  ;;  %v352_v0 = vpop.f32.mrb[9].mxu0 }
 0x101   : > { %v353_v1 = vadd.f32 %v641_v33, %v352_v0  ;;  %v697_v2 = vpop.f32.mrb[10].mxu0  ;;  %710 = vmatprep.mubr.msk.bf16.mxu1 %vm420_vm1, %v401_v61 }
 0x102   : > { %v364_v3 = vadd.f32 %v697_v2, %v641_v33  ;;  %v355_v4 = vpop.f32.mrb[11].mxu0  ;;  %711 = vmatmul.mubr.msk.bf16.gmra.mrb[4].mxu1 %vm420_vm1, %v402_v60  ;;  %v393_v6 = vmax.f32 %v361_v63, 0.0 }
 0x103   : > { %v356_v5 = vadd.f32 %v641_v33, %v355_v4  ;;  %v391_v8 = vmax.f32 %v353_v1, 0.0 }
 0x104   : > { %v394_v7 = vmax.f32 %v364_v3, 0.0 }
 0x105   : > { %v392_v9 = vmax.f32 %v356_v5, 0.0 }
 0x106   : > { %v404_v10 = vpack.c.bf16 %v394_v7, %v393_v6 }
 0x107   : > { %v403_v11 = vpack.c.bf16 %v392_v9, %v391_v8  ;;  %v700_v12 = vpop.f32.mrb[12].mxu0 }
 0x108   : > { %v377_v13 = vadd.f32 %v700_v12, %v641_v33  ;;  %v368_v14 = vpop.f32.mrb[13].mxu0 }
 0x109   : > { %v369_v15 = vadd.f32 %v641_v33, %v368_v14  ;;  %v701_v16 = vpop.f32.mrb[14].mxu0  ;;  %714 = vmatprep.mubr.msk.bf16.mxu1 %vm420_vm1, %v403_v11 }
 0x10a   : > { %v380_v17 = vadd.f32 %v701_v16, %v641_v33  ;;  %v371_v18 = vpop.f32.mrb[15].mxu0  ;;  %715 = vmatmul.mubr.msk.bf16.gmra.mrb[8].mxu1 %vm420_vm1, %v404_v10  ;;  %v397_v20 = vmax.f32 %v377_v13, 0.0 }
 0x10b   : > { %v372_v19 = vadd.f32 %v641_v33, %v371_v18  ;;  %v395_v22 = vmax.f32 %v369_v15, 0.0 }
 0x10c   : > { %v398_v21 = vmax.f32 %v380_v17, 0.0 }
 0x10d   : > { %v396_v23 = vmax.f32 %v372_v19, 0.0 }
 0x10e   : > { %v406_v24 = vpack.c.bf16 %v398_v21, %v397_v20 }
 0x10f   : > { %v405_v25 = vpack.c.bf16 %v396_v23, %v395_v22 }
 0x111   : > { %718 = vmatprep.mubr.msk.bf16.mxu1 %vm420_vm1, %v405_v25 }
 0x112   : > { %719 = vmatmul.mubr.msk.bf16.gmra.mrb[12].mxu1 %vm420_vm1, %v406_v24 }
 0x1cd   : > { %v708_v27 = vpop.f32.mrb[0].mxu1 }
 0x1ce   : > { %v488_v28 = vadd.f32 %v708_v27, %v650_v26  ;;  %v479_v29 = vpop.f32.mrb[1].mxu1 }
 0x1cf   : > { %v480_v30 = vadd.f32 %v650_v26, %v479_v29  ;;  %v709_v31 = vpop.f32.mrb[2].mxu1 }
 0x1d0   : > { %544 = vst [vmem:[%s973_s12 + $0x10] sm:$0xff] %v488_v28  ;;  %v491_v32 = vadd.f32 %v709_v31, %v650_v26  ;;  %v482_v33 = vpop.f32.mrb[3].mxu1 }
 0x1d1   : > { %542 = vst [vmem:[%s973_s12] sm:$0xff] %v480_v30  ;;  %v483_v34 = vadd.f32 %v650_v26, %v482_v33 }
 0x1d2   : > { %545 = vst [vmem:[%s973_s12 + $0x18] sm:$0xff] %v491_v32 }
 0x1d3   : > { %543 = vst [vmem:[%s973_s12 + $0x8] sm:$0xff] %v483_v34 }
 0x1d5   : > { %v712_v35 = vpop.f32.mrb[4].mxu1 }
 0x1d6   : > { %v504_v36 = vadd.f32 %v712_v35, %v650_v26  ;;  %v495_v37 = vpop.f32.mrb[5].mxu1 }
 0x1d7   : > { %v496_v38 = vadd.f32 %v650_v26, %v495_v37  ;;  %v713_v39 = vpop.f32.mrb[6].mxu1 }
 0x1d8   : > { %548 = vst [vmem:[%s973_s12 + $0x30] sm:$0xff] %v504_v36  ;;  %v507_v40 = vadd.f32 %v713_v39, %v650_v26  ;;  %v498_v41 = vpop.f32.mrb[7].mxu1 }
 0x1d9   : > { %546 = vst [vmem:[%s973_s12 + $0x20] sm:$0xff] %v496_v38  ;;  %v499_v42 = vadd.f32 %v650_v26, %v498_v41 }
 0x1da   : > { %549 = vst [vmem:[%s973_s12 + $0x38] sm:$0xff] %v507_v40 }
 0x1db   : > { %547 = vst [vmem:[%s973_s12 + $0x28] sm:$0xff] %v499_v42 }
 0x1dd   : > { %v716_v43 = vpop.f32.mrb[8].mxu1 }
 0x1de   : > { %v520_v44 = vadd.f32 %v716_v43, %v650_v26  ;;  %v511_v45 = vpop.f32.mrb[9].mxu1 }
 0x1df   : > { %v512_v46 = vadd.f32 %v650_v26, %v511_v45  ;;  %v717_v47 = vpop.f32.mrb[10].mxu1 }
 0x1e0   : > { %552 = vst [vmem:[%s973_s12 + $0x50] sm:$0xff] %v520_v44  ;;  %v523_v48 = vadd.f32 %v717_v47, %v650_v26  ;;  %v514_v49 = vpop.f32.mrb[11].mxu1 }
 0x1e1   : > { %550 = vst [vmem:[%s973_s12 + $0x40] sm:$0xff] %v512_v46  ;;  %v515_v50 = vadd.f32 %v650_v26, %v514_v49 }
 0x1e2   : > { %553 = vst [vmem:[%s973_s12 + $0x58] sm:$0xff] %v523_v48 }
 0x1e3   : > { %551 = vst [vmem:[%s973_s12 + $0x48] sm:$0xff] %v515_v50 }
 0x1e5   : > { %v720_v51 = vpop.f32.mrb[12].mxu1 }
 0x1e6   : > { %v536_v52 = vadd.f32 %v720_v51, %v650_v26  ;;  %v527_v53 = vpop.f32.mrb[13].mxu1 }
 0x1e7   : > { %v528_v54 = vadd.f32 %v650_v26, %v527_v53  ;;  %v721_v55 = vpop.f32.mrb[14].mxu1 }
 0x1e8   : > { %556 = vst [vmem:[%s973_s12 + $0x70] sm:$0xff] %v536_v52  ;;  %v539_v56 = vadd.f32 %v721_v55, %v650_v26  ;;  %v530_v57 = vpop.f32.mrb[15].mxu1 }
 0x1e9   : > { %554 = vst [vmem:[%s973_s12 + $0x60] sm:$0xff] %v528_v54  ;;  %v531_v58 = vadd.f32 %v650_v26, %v530_v57 }
 0x1ea   : > { %557 = vst [vmem:[%s973_s12 + $0x78] sm:$0xff] %v539_v56 }
 0x1eb   : > { %555 = vst [vmem:[%s973_s12 + $0x68] sm:$0xff] %v531_v58 }
 0x1ec   : > { %776 = shalt.err (!%p773_p3)
}
 0x1ed   : > { %s777_s6 = scalar_lea.hbm %s993_s17, 2048  ;;  %s781_s9 = scalar_lea.hbm %s1048_s5, 4096 }
 0x1ee   : > { %p778_p4 = scmp.ne.s32.totalorder %s993_s17, %s777_s6  ;;  %p782_p9 = scmp.lt.u32.totalorder %s993_s17, %s1048_s5 }
 0x1ef   : > { %p783_p10 = scmp.lt.u32.totalorder %s781_s9, %s777_s6  ;;  %p785_p12 = scmp.lt.u32.totalorder %s777_s6, %s993_s17 }
 0x1f0   : > { %p779_p7 = pnand %p778_p4, %p898_p5 }
 0x1f1   : > { %p784_p11 = por %p783_p10, %p782_p9 }
 0x1f2   : > { %p780_p8 = pneg %p779_p7 }
 0x1f3   : > { %p786_p13 = por %p785_p12, %p784_p11 }
 0x1f5   : > { %p787_p0 = pnand %p786_p13, %p780_p8 }
 0x1f7   : > { %790 = shalt.err (!%p787_p0)
}
 0x1f8   : > { %s828_s12 = smov 128   ;;  %s829_s13 = smov 8  }
 0x1f9   : > { %722 = dma.vmem_to_hbm [thread:$0]  (%p898_p5), %s995_s14, 2048, %s993_s17, %s1002_s22, %s828_s12, %s828_s12, %s829_s13  }
 0x1fa PF: > { %p728_p1 = scmp.ge.s32.totalorder %s825_s21, 2  ;;  %s587_s15 = sand.u32 1, %s813_s18  }
 0x1fb   : > { %s588_s16 = scalar_lea.sflag [#allocation3], %s587_s15 }
 0x1fc   : > { %p725_p2 = pnand %p728_p1, %p902_p6 }
 0x1fe   : > { %808 = dma.done.wait (!%p725_p2), %s588_s16, 2048  }
 0x1ff   : > { %810 = vsyncadd (!%p725_p2), %s588_s16, 4294965248  ;;  %p15_p3 = scmp.ge.s32.totalorder %s885_s24, 4   ;;  %s1051_s18 = smov %s817_s19 }
 0x200   : > { %s1052_s19 = smov %s821_s20  ;;  %s1053_s20 = smov %s896_s27 }
 0x201   : > { %s1054_s21 = smov %s885_s24  ;;  %17 = sbr.rel (!%p15_p3) target bundleno = 3 (0x3), region = 75 }
 0x208   :  { %593 = vsyncpa [#allocation3], 1 }
 0x209   :  { %595 = vsyncpa [#allocation3 + $0x1], 1 }

</bundles_post_ra>
